<compile_context>
chip_gen: v7x
topology: tpu7x:2x2x1
jax: 0.10.0
libtpu: 0.0.40
codegen_flags: <defaults>
</compile_context>

<pallas_src>
import math
import numpy as np
import jax
import jax.numpy as jnp
from jax.experimental import pallas as pl
from jax.experimental.pallas import tpu as pltpu

NUM_HEADS = 8
EMBED_DIM = 64
DIM_SE = 16

# explicit scoped-VMEM budget (well under v7x's 64 MiB physical; per-step usage ~4-8 MiB)
_STAGE_VMEM_LIMIT = 32 * 1024 * 1024


# ------------------------------ tiling helpers -------------------------------

def _largest_divisor_leq(n, cap):
    cap = int(max(1, min(cap, n)))
    for t in range(cap, 0, -1):
        if n % t == 0:
            return t
    return 1


def _pick_row_tile(m, target):
    """Largest divisor of m <= target -> no jnp.pad, no ragged last block."""
    return _largest_divisor_leq(m, target)


def _pick_window_tile(bw, target=128, min_grid=4):
    """Windows per grid step: divides bw exactly; tries to keep >= min_grid grid
    steps (v7x has 2 TensorCores) while batching up to `target` windows."""
    cap = min(target, max(1, bw // min_grid))
    tb = _largest_divisor_leq(bw, cap)
    if tb == 1 and bw > 1:
        tb = _largest_divisor_leq(bw, target)
    return tb


# --------------------------- generic row-tiled call --------------------------

def row_tiled_call(kernel, row_args, bcast_args, out_cols, out_dtype, tm_target=256):
    """Call `kernel(*row_refs, *bcast_refs, o_ref)` with row args tiled over rows.
    The row tile divides M exactly (no padding copies in the XLA wrapper)."""
    M = row_args[0].shape[0]
    if M <= tm_target:
        return pl.pallas_call(
            kernel,
            out_shape=jax.ShapeDtypeStruct((M, out_cols), out_dtype),
        )(*row_args, *bcast_args)

    tm = _pick_row_tile(M, tm_target)
    in_specs = [pl.BlockSpec((tm, a.shape[1]), lambda i: (i, 0)) for a in row_args]
    in_specs += [pl.BlockSpec(a.shape, lambda i, nd=a.ndim: (0,) * nd) for a in bcast_args]
    return pl.pallas_call(
        kernel,
        out_shape=jax.ShapeDtypeStruct((M, out_cols), out_dtype),
        grid=(M // tm,),
        in_specs=in_specs,
        out_specs=pl.BlockSpec((tm, out_cols), lambda i: (i, 0)),
        compiler_params=pltpu.CompilerParams(
            dimension_semantics=("parallel",),
            vmem_limit_bytes=_STAGE_VMEM_LIMIT),
    )(*row_args, *bcast_args)


# -------------------------------- linear kernel ------------------------------

def _linear_kernel(x_ref, w_ref, b_ref, o_ref):
    w = w_ref[...]
    y = jnp.dot(x_ref[...].astype(w.dtype), w, preferred_element_type=jnp.float32)
    o_ref[...] = (y + b_ref[...]).astype(o_ref.dtype)


def linear(x2d, w, b):
    """y = x @ w + b.  Weight dtype decides MXU input dtype (bf16 weights -> bf16 MXU)."""
    return row_tiled_call(_linear_kernel, [x2d], [w, b.reshape(1, -1)],
                          w.shape[1], x2d.dtype)


# ------------------ fused encoder stage (LN + W-MSA + proj) ------------------

def _make_stage_kernel(nh, hd, Cd, n_chunks, Rc, has_ln):

    def compute(x, lng, lnb, scale_ref, wqkv_ref, bqkv_ref, bias_ref,
                wproj_ref, bproj_ref, heads_ref):
        if has_ln:  # post-segment-merge LayerNorm of the reference, fused as pre-LN here
            mu = jnp.mean(x, axis=-1, keepdims=True)
            var = jnp.mean(jnp.square(x - mu), axis=-1, keepdims=True)
            x = (x - mu) * jax.lax.rsqrt(var + 1e-5) * lng + lnb

        wqkv = wqkv_ref[...]
        # one big qkv matmul on the flattened (TB*Ntok, Cd) slab
        qkv = jnp.dot(x.astype(wqkv.dtype), wqkv,
                      preferred_element_type=jnp.float32) + bqkv_ref[...]       # (R, 3C)

        # block-diagonal window attention in chunks of G whole windows (Rc = G*Ntok rows)
        for c in range(n_chunks):
            r0 = c * Rc
            heads_out = []
            for h in range(nh):                                   # static head loop
                qh = qkv[r0:r0 + Rc, h * hd:(h + 1) * hd]
                kh = qkv[r0:r0 + Rc, Cd + h * hd:Cd + (h + 1) * hd]
                vh = qkv[r0:r0 + Rc, 2 * Cd + h * hd:2 * Cd + (h + 1) * hd]
                # F.normalize(., dim=-1); per-head logit scale folded into q (saves the
                # Ntok^2 post-matmul multiply).  rsqrt goes to the EUP.
                qn = qh * (jax.lax.rsqrt(
                    jnp.maximum(jnp.sum(qh * qh, -1, keepdims=True), 1e-24)) * scale_ref[h])
                kn = kh * jax.lax.rsqrt(
                    jnp.maximum(jnp.sum(kh * kh, -1, keepdims=True), 1e-24))
                s = jax.lax.dot_general(
                    qn.astype(jnp.bfloat16), kn.astype(jnp.bfloat16),
                    (((1,), (1,)), ((), ())),
                    preferred_element_type=jnp.float32)                          # (Rc, Rc)
                # rel-pos bias on the diagonal window blocks, -1e9 off-block -> softmax 0
                s = s + bias_ref[h]
                s = s - jnp.max(s, axis=-1, keepdims=True)
                p = jnp.exp(s)
                p = p * pl.reciprocal(jnp.sum(p, axis=-1, keepdims=True), approx=False)
                heads_out.append(jnp.dot(p.astype(jnp.bfloat16), vh.astype(jnp.bfloat16),
                                         preferred_element_type=jnp.float32))    # (Rc, hd)
            # re-form concat(heads) in a bf16 VMEM slab (full-row stores)
            heads_ref[r0:r0 + Rc, :] = jnp.concatenate(
                heads_out, axis=-1).astype(heads_ref.dtype)

        # ONE output projection with K=Cd instead of nh small K=hd matmuls
        y = jnp.dot(heads_ref[...], wproj_ref[...],
                    preferred_element_type=jnp.float32) + bproj_ref[...]
        return y

    if has_ln:
        def kernel(scale_ref, x_ref, lng_ref, lnb_ref, wqkv_ref, bqkv_ref,
                   bias_ref, wproj_ref, bproj_ref, o_ref, heads_ref):
            y = compute(x_ref[...].astype(jnp.float32), lng_ref[...], lnb_ref[...],
                        scale_ref, wqkv_ref, bqkv_ref, bias_ref, wproj_ref, bproj_ref,
                        heads_ref)
            o_ref[...] = y.astype(o_ref.dtype)
        return kernel

    def kernel(scale_ref, x_ref, wqkv_ref, bqkv_ref,
               bias_ref, wproj_ref, bproj_ref, o_ref, heads_ref):
        y = compute(x_ref[...].astype(jnp.float32), None, None,
                    scale_ref, wqkv_ref, bqkv_ref, bias_ref, wproj_ref, bproj_ref,
                    heads_ref)
        o_ref[...] = y.astype(o_ref.dtype)
    return kernel


def _make_chunk_bias(rpb, g):
    """Tile the (nh, Ntok, Ntok) rel-pos bias along the diagonal of an (Rc, Rc) chunk,
    masking cross-window entries with -1e9 (exp underflows to exactly 0)."""
    nh, n, _ = rpb.shape
    if g == 1:
        return rpb
    rc = g * n
    ridx = jnp.arange(rc) // n
    same = ridx[:, None] == ridx[None, :]
    return jnp.where(same[None], jnp.tile(rpb, (1, g, g)), jnp.float32(-1e9))


def fused_stage(x2d, p, rpb, ntok, pre_ln=None, tb_target=128):
    """x2d: (BW*Ntok, Cd) rows grouped per window -> same shape.
    One grid step handles TB windows; attention is block-diagonal within the step."""
    rows, Cd = x2d.shape
    bw = rows // ntok
    nh = NUM_HEADS
    hd = Cd // nh

    tb = _pick_window_tile(bw, tb_target)                      # windows per grid step
    g = _largest_divisor_leq(tb, max(1, 128 // ntok))          # windows per attention chunk
    rc = g * ntok
    n_chunks = tb // g
    r_blk = tb * ntok                                          # rows per grid step
    bias = _make_chunk_bias(rpb, g)

    ln_args, ln_specs = [], []
    if pre_ln is not None:
        ln_args = [pre_ln[0].reshape(1, Cd), pre_ln[1].reshape(1, Cd)]
        ln_specs = [pl.BlockSpec((1, Cd), lambda i: (0, 0)),
                    pl.BlockSpec((1, Cd), lambda i: (0, 0))]

    kernel = _make_stage_kernel(nh, hd, Cd, n_chunks, rc, pre_ln is not None)
    # NOTE: stage-1 output has Cd=64 (<128 lanes) -> partially-masked stores; cheap after
    # TB-batching.  On v5e, if the x stream shows up exposed in xprof, add
    # pipeline_mode=pl.Buffered(3) to the x BlockSpec.
    return pl.pallas_call(
        kernel,
        out_shape=jax.ShapeDtypeStruct((rows, Cd), x2d.dtype),
        grid=(bw // tb,),
        in_specs=[
            pl.BlockSpec(memory_space=pltpu.MemorySpace.SMEM),      # per-head scale (nh,)
            pl.BlockSpec((r_blk, Cd), lambda i: (i, 0)),            # x rows for TB windows
        ] + ln_specs + [
            pl.BlockSpec((Cd, 3 * Cd), lambda i: (0, 0)),           # w_qkv (bf16, resident)
            pl.BlockSpec((1, 3 * Cd), lambda i: (0, 0)),            # qkv bias
            pl.BlockSpec((nh, rc, rc), lambda i: (0, 0, 0)),        # chunk rel-pos bias/mask
            pl.BlockSpec((Cd, Cd), lambda i: (0, 0)),               # w_proj (bf16)
            pl.BlockSpec((1, Cd), lambda i: (0, 0)),                # b_proj
        ],
        out_specs=pl.BlockSpec((r_blk, Cd), lambda i: (i, 0)),
        scratch_shapes=[pltpu.VMEM((r_blk, Cd), jnp.bfloat16)],     # concat(heads) slab
        compiler_params=pltpu.CompilerParams(
            dimension_semantics=("parallel",),
            vmem_limit_bytes=_STAGE_VMEM_LIMIT),
    )(p["scale"], x2d, *ln_args, p["w_qkv_bf16"], p["qkv_bias"], bias,
      p["w_proj_bf16"], p["b_proj2d"])


# ----------------- relative position bias (param-derived constant) -----------

def make_rel_pos_bias(window_size, num_heads, cpb_w1, cpb_b1, cpb_w2):
    Wh, Ww = window_size
    rh = jnp.arange(-(Wh - 1), Wh, dtype=jnp.float32)
    rw = jnp.arange(-(Ww - 1), Ww, dtype=jnp.float32)
    gh, gw = jnp.meshgrid(rh, rw, indexing="ij")
    table = jnp.stack([gh, gw], axis=-1)                          # (2Wh-1, 2Ww-1, 2)
    table = table / jnp.array([Wh - 1, Ww - 1], jnp.float32)
    table = table * 8.0
    table = jnp.sign(table) * jnp.log2(jnp.abs(table) + 1.0) / np.log2(8.0)
    flat = table.reshape(-1, 2)                                   # (T, 2)
    hidden = jax.nn.relu(linear(flat, cpb_w1, cpb_b1))
    bias_table = linear(hidden, cpb_w2, jnp.zeros((num_heads,), jnp.float32))  # (T, nh)

    coords = np.stack(np.meshgrid(np.arange(Wh), np.arange(Ww), indexing="ij"))
    coords_flatten = coords.reshape(2, -1)
    rel = coords_flatten[:, :, None] - coords_flatten[:, None, :]
    rel = rel.transpose(1, 2, 0).copy()
    rel[:, :, 0] += Wh - 1
    rel[:, :, 1] += Ww - 1
    rel[:, :, 0] *= 2 * Ww - 1
    idx = rel.sum(-1)
    N = Wh * Ww
    rpb = bias_table[idx.reshape(-1)].reshape(N, N, num_heads).transpose(2, 0, 1)
    rpb = 16.0 * jax.nn.sigmoid(rpb)
    return rpb                                                    # (nh, N, N)


# ----------------------------------- params ----------------------------------

def init_attn_params(key, dim):
    ks = jax.random.split(key, 6)
    r = lambda k, shp, s=0.02: s * jax.random.normal(k, shp, jnp.float32)
    return dict(
        w_qkv=r(ks[0], (dim, 3 * dim)),
        q_bias=r(ks[1], (dim,)),
        v_bias=r(ks[2], (dim,)),
        logit_scale=jnp.full((NUM_HEADS,), math.log(10.0), jnp.float32),
        w_proj=r(ks[3], (dim, dim)),
        b_proj=jnp.zeros((dim,), jnp.float32),
        cpb_w1=r(ks[4], (2, 512), 0.1),
        cpb_b1=jnp.zeros((512,), jnp.float32),
        cpb_w2=r(ks[5], (512, NUM_HEADS), 0.1),
    )


def prepare_attn(p, dim):
    q = dict(p)
    q["w_qkv_bf16"] = p["w_qkv"].astype(jnp.bfloat16)
    q["w_proj_bf16"] = p["w_proj"].astype(jnp.bfloat16)
    # qkv bias = [q_bias, 0, v_bias] exactly as in the module
    q["qkv_bias"] = jnp.concatenate(
        [p["q_bias"], jnp.zeros_like(p["v_bias"]), p["v_bias"]], axis=0).reshape(1, 3 * dim)
    q["b_proj2d"] = p["b_proj"].reshape(1, dim)
    # clamp(log-scale, max=log(100)).exp(), per head
    q["scale"] = jnp.exp(jnp.minimum(p["logit_scale"], math.log(100.0))).astype(jnp.float32)
    return q


def init_params(key, num_nodes, len_hist, len_pred, len_patch):
    num_patch = len_hist // len_patch
    dim_u = num_patch * EMBED_DIM
    ks = jax.random.split(key, 10)
    r = lambda k, shp, s=0.02: s * jax.random.normal(k, shp, jnp.float32)

    emb_w = r(ks[1], (len_patch, EMBED_DIM))
    emb_b = jnp.zeros((EMBED_DIM,), jnp.float32)
    stpe_w = r(ks[2], (num_patch * EMBED_DIM + DIM_SE + 2, dim_u))
    stpe_b = jnp.zeros((dim_u,), jnp.float32)

    # Compose the patch-embedding linear into the STPE projection (exact in real
    # arithmetic) and keep one (L + DIM_SE + 2, dim_U) weight -> single K=82 matmul.
    w_s = stpe_w[:num_patch * EMBED_DIM].reshape(num_patch, EMBED_DIM, dim_u)
    w_patch = jnp.einsum("te,peu->ptu", emb_w, w_s).reshape(num_patch * len_patch, dim_u)
    b_comp = stpe_b + jnp.einsum("e,peu->u", emb_b, w_s)
    w_full = jnp.concatenate([w_patch, stpe_w[num_patch * EMBED_DIM:]], axis=0)

    enc1 = init_attn_params(ks[3], EMBED_DIM)
    enc2 = init_attn_params(ks[4], 2 * EMBED_DIM)
    enc3 = init_attn_params(ks[5], 4 * EMBED_DIM)

    params = dict(
        SE=r(ks[0], (num_nodes, DIM_SE)),
        stpe_w=w_full.astype(jnp.bfloat16),
        stpe_b=b_comp,
        enc1=prepare_attn(enc1, EMBED_DIM),
        enc2=prepare_attn(enc2, 2 * EMBED_DIM),
        enc3=prepare_attn(enc3, 4 * EMBED_DIM),
        sm1_g=jnp.ones((2 * EMBED_DIM,), jnp.float32),
        sm1_b=jnp.zeros((2 * EMBED_DIM,), jnp.float32),
        sm2_g=jnp.ones((4 * EMBED_DIM,), jnp.float32),
        sm2_b=jnp.zeros((4 * EMBED_DIM,), jnp.float32),
        proj_w=r(ks[6], (dim_u, len_pred)).astype(jnp.bfloat16),
        proj_b=jnp.zeros((len_pred,), jnp.float32),
    )
    # Relative position biases are constants derived from parameters; precompute once.
    params["rpb1"] = make_rel_pos_bias((2, num_patch // 2), NUM_HEADS,
                                       enc1["cpb_w1"], enc1["cpb_b1"], enc1["cpb_w2"])
    params["rpb2"] = make_rel_pos_bias((2, num_patch // 4), NUM_HEADS,
                                       enc2["cpb_w1"], enc2["cpb_b1"], enc2["cpb_w2"])
    params["rpb3"] = make_rel_pos_bias((2, num_patch // 8), NUM_HEADS,
                                       enc3["cpb_w1"], enc3["cpb_b1"], enc3["cpb_w2"])
    return params


# ----------------------------------- forward ---------------------------------

def hutformer_forward(params, history_data, len_patch):
    """Encoder-mode forward. history_data: (B, L, N, 3) -> (B, len_pred, N, 1)."""
    B, L, N, C = history_data.shape
    P = L // len_patch
    ed = EMBED_DIM
    BW = B * N

    # patching + embedding + STPE as ONE linear (embedding folded into the STPE weight)
    x_hist = jnp.transpose(history_data[:, :, :, 0], (0, 2, 1)).reshape(BW, L)
    SE = jnp.broadcast_to(params["SE"][None], (B, N, DIM_SE)).reshape(BW, DIM_SE)
    feat = history_data[:, -1, :, 1:].reshape(BW, C - 1)
    s_in = jnp.concatenate([x_hist, SE, feat], axis=-1)            # (BW, L+DIM_SE+2)
    U = linear(s_in, params["stpe_w"], params["stpe_b"])           # (BW, P*ed)

    # hierarchical encoder: one fused pallas_call per stage; all inter-stage reshapes
    # (segment merging included) are free views of the (rows, Cd) slabs; the merge
    # LayerNorm is fused as the pre-LN of the following stage.
    x1 = U.reshape(BW * P, ed)
    h1 = fused_stage(x1, params["enc1"], params["rpb1"], P)
    x2 = h1.reshape(BW * (P // 2), 2 * ed)
    h2 = fused_stage(x2, params["enc2"], params["rpb2"], P // 2,
                     pre_ln=(params["sm1_g"], params["sm1_b"]))
    x3 = h2.reshape(BW * (P // 4), 4 * ed)
    h3 = fused_stage(x3, params["enc3"], params["rpb3"], P // 4,
                     pre_ln=(params["sm2_g"], params["sm2_b"]))

    # projection head
    flat = h3.reshape(BW, -1)                                      # (BW, dim_U)
    pred = linear(flat, params["proj_w"], params["proj_b"]).reshape(B, N, -1)
    pred = jnp.transpose(pred, (0, 2, 1))[..., None]               # (B, len_pred, N, 1)
    return pred

# TODO(synk): dropout (attn_drop/proj_drop) is identity here (eval semantics); the
# mode='decoder' branch of the PyTorch module is not constructed by the default
# __init__ and is not implemented.


if __name__ == "__main__":
    B, NUM_NODES, C_FEAT = 2, 4, 3
    LEN_HIST, LEN_PRED, LEN_PATCH = 64, 64, 4   # num_patch = 16 -> windows (2,8),(2,4),(2,2)

    key = jax.random.PRNGKey(0)
    k_params, k_data = jax.random.split(key)
    params = init_params(k_params, NUM_NODES, LEN_HIST, LEN_PRED, LEN_PATCH)
    history = jax.random.normal(k_data, (B, LEN_HIST, NUM_NODES, C_FEAT), jnp.float32)

    fwd = jax.jit(hutformer_forward, static_argnums=(2,))
    out = jax.block_until_ready(fwd(params, history, LEN_PATCH))
    assert out.shape == (B, LEN_PRED, NUM_NODES, 1), out.shape
    assert bool(jnp.all(jnp.isfinite(out)))
    print("KERNEL_OK")
</pallas_src>

<mosaic_0001>
module attributes {stable_mosaic.version = 11 : i64} {
  func.func @_linear_kernel(%arg0: memref<45x2xf32, #tpu.memory_space<vmem>>, %arg1: memref<2x512xf32, #tpu.memory_space<vmem>>, %arg2: memref<1x512xf32, #tpu.memory_space<vmem>>, %arg3: memref<45x512xf32, #tpu.memory_space<vmem>>) attributes {dimension_semantics = [], scalar_prefetch = 0 : i64, scratch_operands = 0 : i64, tpu.core_type = #tpu.core_type<tc>} {
    %c0 = arith.constant 0 : index
    %c0_0 = arith.constant 0 : index
    %0 = vector.load %arg1[%c0, %c0_0] : memref<2x512xf32, #tpu.memory_space<vmem>>, vector<2x512xf32>
    %c0_1 = arith.constant 0 : index
    %c0_2 = arith.constant 0 : index
    %1 = vector.load %arg0[%c0_1, %c0_2] : memref<45x2xf32, #tpu.memory_space<vmem>>, vector<45x2xf32>
    %cst = arith.constant dense<0.000000e+00> : vector<45x512xf32>
    %2 = tpu.matmul %1, %0, %cst {dimension_numbers = #tpu.dot_dimension_numbers<[1], [0], [0], [1], [0, 0, 1, 1], [], []>} : vector<45x2xf32>, vector<2x512xf32>, vector<45x512xf32> -> vector<45x512xf32>
    %c0_3 = arith.constant 0 : index
    %c0_4 = arith.constant 0 : index
    %3 = vector.load %arg2[%c0_3, %c0_4] : memref<1x512xf32, #tpu.memory_space<vmem>>, vector<1x512xf32>
    %4 = vector.broadcast %3 : vector<1x512xf32> to vector<45x512xf32>
    %5 = arith.addf %2, %4 : vector<45x512xf32>
    %c0_5 = arith.constant 0 : index
    %c0_6 = arith.constant 0 : index
    %6 = vector.load %arg3[%c0_5, %c0_6] : memref<45x512xf32, #tpu.memory_space<vmem>>, vector<45x512xf32>
    tpu.vector_store %arg3[%c0_5, %c0_6], %5 {strides = array<i32>} : memref<45x512xf32, #tpu.memory_space<vmem>>, vector<45x512xf32>,
    return
  }
}

</mosaic_0001>

<bundles_post_ra>
// kernel: tpu_custom_call.1
= control target key start
LH: loop header
LB: loop body
LE: loop exit
PB: predicated region body
PF: predicated region fallthrough
CT: control target
= control target key end

     0   :  { %v24_v1 = vlaneseq  ;;  %v378_v2 = vmov 1983009808   ;;  %v379_v4 = vmov 0.0   ;;  %s483_s0 = inlined_call_operand.vmem [shape: f32[45,2], index: 0, kind: input, shape index: {}]   ;;  %s484_s1 = inlined_call_operand.vmem [shape: f32[2,512], index: 1, kind: input, shape index: {}]   ;;  %s485_s2 = inlined_call_operand.vmem [shape: f32[1,512], index: 2, kind: input, shape index: {}]   ;;  %s486_s3 = inlined_call_operand.hbm [shape: f32[45,512], index: 3, kind: output, shape index: {}]  }
   0x1   :  { %v15_v0 = vld [vmem:[%s484_s1] sm:$0xff]  ;;  %v47_v3 = vunpack.c.l.s4 %v378_v2  ;;  %154 = vmatprep.mubr.f32.mxu0 %v379_v4  ;;  %255 = vmatprep.mubr.f32.mxu1 %v379_v4 }
   0x2   :  { %v25_v5 = vshrl.u32 %v24_v1, 7  ;;  %v45_v7 = vcombine.high %v15_v0, %v15_v0 }
   0x3   :  { %v48_v6 = vunpack.c.0.s8 %v47_v3 }
   0x4   :  { %8 = vsyncpa [#allocation3], 0  ;;  %vm81_vm0 = vcmask 1041408   ;;  %v16_v13 = vld [vmem:[%s483_s0] sm:$0xff]  ;;  %vm62_vm1 = vcmask 15360   ;;  %v17_v14 = vld [vmem:[%s483_s0 + $0x8] sm:$0xff] }
   0x5   :  { %v51_v8 = vsub.s32 %v48_v6, %v25_v5  ;;  %v18_v15 = vld [vmem:[%s483_s0 + $0x10] sm:$0xff]  ;;  %v19_v16 = vld [vmem:[%s483_s0 + $0x18] sm:$0xff]  ;;  %v20_v17 = vld [vmem:[%s483_s0 + $0x20] sm:$0xff]  ;;  %v26_v19 = vsub.s32 0, %v25_v5  ;;  %v34_v20 = vsub.s32 2, %v25_v5  ;;  %v30_v22 = vsub.s32 1, %v25_v5 }
   0x6   :  { %v21_v18 = vld [vmem:[%s483_s0 + $0x28] sm:$0x1f]  ;;  %v22_v21 = vld [vmem:[%s485_s2] sm:$0xf]  ;;  %v38_v23 = vsub.s32 3, %v25_v5  ;;  %s380_s0 = smov [#allocation2]  }
   0x7   :  { %v52_v9 = vrot.slane %v15_v0, %v51_v8  ;;  %v59_v10 = vrot.slane %v45_v7, %v51_v8  ;;  %v439_v24 = vrot.slane %v22_v21, %v26_v19  ;;  %v441_v25 = vrot.slane %v22_v21, %v34_v20  ;;  %s321_s2 = sshll.u32 %s380_s0, 4  ;;  %s322_s2 = int_to_ptr.vmem [resolvable:$true] %s321_s2 }
   0x8   :  { %v443_v26 = vrot.slane %v22_v21, %v30_v22  ;;  %v445_v27 = vrot.slane %v22_v21, %v38_v23  ;;  %s354_s27 = scalar_lea.vmem %s322_s2, 3072  ;;  %p359_p1 = scmp.lt.s32.totalorder %s322_s2, %s322_s2 }
   0x9   :  { %v60_v11 = vcombine.high %v52_v9, %v52_v9  ;;  %v61_v12 = vcombine.high %v59_v10, %v59_v10  ;;  %p355_p0 = scmp.ne.s32.totalorder %s322_s2, %s354_s27  ;;  %p360_p2 = scmp.lt.s32.totalorder %s354_s27, %s354_s27 }
   0xb   :  { %332 = vmatprep.subr.msk.mxu0 %vm81_vm0, %v60_v11  ;;  %340 = vmatprep.subr.msk.mxu1 %vm81_vm0, %v61_v12  ;;  %p361_p3 = por %p360_p2, %p359_p1 }
   0xc   :  { %333 = vmatpush1.msk.msra.mxu0 %vm81_vm0, %v52_v9  ;;  %341 = vmatpush1.msk.msra.mxu1 %vm81_vm0, %v59_v10 }
   0xd   :  { %334 = vmatmul.mubr.msk.f32.vlgmr.msra.gmra.mrb[0].mxu0 %vm62_vm1, %v16_v13  ;;  %342 = vmatmul.mubr.msk.f32.vlgmr.msra.gmra.mrb[0].mxu1 %vm62_vm1, %v16_v13  ;;  %p362_p4 = pnand %p361_p3, %p355_p0 }
   0xe   :  { %160 = vmatprep.mubr.f32.mxu0 %v379_v4  ;;  %261 = vmatprep.mubr.f32.mxu1 %v379_v4 }
  0x11   :  { %335 = vmatmul.mubr.msk.f32.gmra.mrb[2].mxu0 %vm62_vm1, %v17_v14  ;;  %343 = vmatmul.mubr.msk.f32.gmra.mrb[2].mxu1 %vm62_vm1, %v17_v14 }
  0x12   :  { %166 = vmatprep.mubr.f32.mxu0 %v379_v4  ;;  %267 = vmatprep.mubr.f32.mxu1 %v379_v4 }
  0x15   :  { %336 = vmatmul.mubr.msk.f32.gmra.mrb[4].mxu0 %vm62_vm1, %v18_v15  ;;  %344 = vmatmul.mubr.msk.f32.gmra.mrb[4].mxu1 %vm62_vm1, %v18_v15 }
  0x16   :  { %172 = vmatprep.mubr.f32.mxu0 %v379_v4  ;;  %273 = vmatprep.mubr.f32.mxu1 %v379_v4 }
  0x19   :  { %337 = vmatmul.mubr.msk.f32.gmra.mrb[6].mxu0 %vm62_vm1, %v19_v16  ;;  %345 = vmatmul.mubr.msk.f32.gmra.mrb[6].mxu1 %vm62_vm1, %v19_v16 }
  0x1a   :  { %178 = vmatprep.mubr.f32.mxu0 %v379_v4  ;;  %279 = vmatprep.mubr.f32.mxu1 %v379_v4 }
  0x1d   :  { %338 = vmatmul.mubr.msk.f32.gmra.mrb[8].mxu0 %vm62_vm1, %v20_v17  ;;  %346 = vmatmul.mubr.msk.f32.gmra.mrb[8].mxu1 %vm62_vm1, %v20_v17 }
  0x1e   :  { %184 = vmatprep.mubr.f32.mxu0 %v379_v4  ;;  %285 = vmatprep.mubr.f32.mxu1 %v379_v4 }
  0x21   :  { %339 = vmatmul.mubr.msk.f32.gmra.mrb[10].mxu0 %vm62_vm1, %v21_v18  ;;  %347 = vmatmul.mubr.msk.f32.gmra.mrb[10].mxu1 %vm62_vm1, %v21_v18 }
  0xe0   :  { %v156_v28 = vpop.f32.mrb[0].mxu0  ;;  %v257_v29 = vpop.f32.mrb[0].mxu1 }
  0xe1   :  { %v157_v30 = vadd.f32 %v156_v28, %v439_v24  ;;  %v258_v31 = vadd.f32 %v257_v29, %v441_v25  ;;  %v158_v32 = vpop.f32.mrb[1].mxu0  ;;  %v259_v33 = vpop.f32.mrb[1].mxu1 }
  0xe2   :  { %v159_v34 = vadd.f32 %v158_v32, %v443_v26  ;;  %v260_v35 = vadd.f32 %v259_v33, %v445_v27 }
  0xe3   :  { %292 = vst [vmem:[#allocation2] sm:$0xff] %v157_v30  ;;  %294 = vst [vmem:[#allocation2 + $0x10] sm:$0xff] %v258_v31 }
  0xe4   :  { %293 = vst [vmem:[#allocation2 + $0x8] sm:$0xff] %v159_v34  ;;  %295 = vst [vmem:[#allocation2 + $0x18] sm:$0xff] %v260_v35  ;;  %v162_v36 = vpop.f32.mrb[2].mxu0  ;;  %v263_v37 = vpop.f32.mrb[2].mxu1 }
  0xe5   :  { %v163_v38 = vadd.f32 %v162_v36, %v439_v24  ;;  %v264_v39 = vadd.f32 %v263_v37, %v441_v25  ;;  %v164_v40 = vpop.f32.mrb[3].mxu0  ;;  %v265_v41 = vpop.f32.mrb[3].mxu1 }
  0xe6   :  { %v165_v42 = vadd.f32 %v164_v40, %v443_v26  ;;  %v266_v43 = vadd.f32 %v265_v41, %v445_v27 }
  0xe7   :  { %296 = vst [vmem:[#allocation2 + $0x20] sm:$0xff] %v163_v38  ;;  %298 = vst [vmem:[#allocation2 + $0x30] sm:$0xff] %v264_v39 }
  0xe8   :  { %297 = vst [vmem:[#allocation2 + $0x28] sm:$0xff] %v165_v42  ;;  %299 = vst [vmem:[#allocation2 + $0x38] sm:$0xff] %v266_v43  ;;  %v168_v44 = vpop.f32.mrb[4].mxu0  ;;  %v269_v45 = vpop.f32.mrb[4].mxu1 }
  0xe9   :  { %v169_v46 = vadd.f32 %v168_v44, %v439_v24  ;;  %v270_v47 = vadd.f32 %v269_v45, %v441_v25  ;;  %v170_v48 = vpop.f32.mrb[5].mxu0  ;;  %v271_v49 = vpop.f32.mrb[5].mxu1 }
  0xea   :  { %v171_v50 = vadd.f32 %v170_v48, %v443_v26  ;;  %v272_v51 = vadd.f32 %v271_v49, %v445_v27 }
  0xeb   :  { %300 = vst [vmem:[#allocation2 + $0x40] sm:$0xff] %v169_v46  ;;  %302 = vst [vmem:[#allocation2 + $0x50] sm:$0xff] %v270_v47 }
  0xec   :  { %301 = vst [vmem:[#allocation2 + $0x48] sm:$0xff] %v171_v50  ;;  %303 = vst [vmem:[#allocation2 + $0x58] sm:$0xff] %v272_v51  ;;  %v174_v52 = vpop.f32.mrb[6].mxu0  ;;  %v275_v53 = vpop.f32.mrb[6].mxu1 }
  0xed   :  { %v175_v54 = vadd.f32 %v174_v52, %v439_v24  ;;  %v276_v55 = vadd.f32 %v275_v53, %v441_v25  ;;  %v176_v56 = vpop.f32.mrb[7].mxu0  ;;  %v277_v57 = vpop.f32.mrb[7].mxu1 }
  0xee   :  { %v177_v58 = vadd.f32 %v176_v56, %v443_v26  ;;  %v278_v59 = vadd.f32 %v277_v57, %v445_v27 }
  0xef   :  { %304 = vst [vmem:[#allocation2 + $0x60] sm:$0xff] %v175_v54  ;;  %306 = vst [vmem:[#allocation2 + $0x70] sm:$0xff] %v276_v55 }
  0xf0   :  { %305 = vst [vmem:[#allocation2 + $0x68] sm:$0xff] %v177_v58  ;;  %307 = vst [vmem:[#allocation2 + $0x78] sm:$0xff] %v278_v59  ;;  %v180_v60 = vpop.f32.mrb[8].mxu0  ;;  %v281_v61 = vpop.f32.mrb[8].mxu1 }
  0xf1   :  { %v181_v62 = vadd.f32 %v180_v60, %v439_v24  ;;  %v282_v63 = vadd.f32 %v281_v61, %v441_v25  ;;  %v182_v0 = vpop.f32.mrb[9].mxu0  ;;  %v283_v1 = vpop.f32.mrb[9].mxu1 }
  0xf2   :  { %v183_v2 = vadd.f32 %v182_v0, %v443_v26  ;;  %v284_v3 = vadd.f32 %v283_v1, %v445_v27 }
  0xf3   :  { %308 = vst [vmem:[#allocation2 + $0x80] sm:$0xff] %v181_v62  ;;  %310 = vst [vmem:[#allocation2 + $0x90] sm:$0xff] %v282_v63 }
  0xf4   :  { %309 = vst [vmem:[#allocation2 + $0x88] sm:$0xff] %v183_v2  ;;  %311 = vst [vmem:[#allocation2 + $0x98] sm:$0xff] %v284_v3  ;;  %v186_v4 = vpop.f32.mrb[10].mxu0  ;;  %v287_v5 = vpop.f32.mrb[10].mxu1 }
  0xf5   :  { %v187_v6 = vadd.f32 %v186_v4, %v439_v24  ;;  %v288_v7 = vadd.f32 %v287_v5, %v441_v25  ;;  %v188_v8 = vpop.f32.mrb[11].mxu0  ;;  %v289_v9 = vpop.f32.mrb[11].mxu1 }
  0xf6   :  { %v189_v10 = vadd.f32 %v188_v8, %v443_v26  ;;  %v290_v11 = vadd.f32 %v289_v9, %v445_v27 }
  0xf7   :  { %312 = vst [vmem:[#allocation2 + $0xa0] sm:$0x1f] %v187_v6  ;;  %314 = vst [vmem:[#allocation2 + $0xb0] sm:$0x1f] %v288_v7 }
  0xf8   :  { %313 = vst [vmem:[#allocation2 + $0xa8] sm:$0x1f] %v189_v10  ;;  %315 = vst [vmem:[#allocation2 + $0xb8] sm:$0x1f] %v290_v11 }
  0xf9   :  { %365 = shalt.err (!%p362_p4)
}
  0xfa   :  { %s366_s30 = scalar_lea.hbm %s486_s3, 3072 }
  0xfb   :  { %p367_p5 = scmp.ne.s32.totalorder %s486_s3, %s366_s30  ;;  %p370_p6 = scmp.lt.u32.totalorder %s366_s30, %s486_s3 }
  0xfd   :  { %p372_p7 = pnand %p370_p6, %p367_p5 }
  0xff   :  { %375 = shalt.err (!%p372_p7)
}
 0x100   :  { %s381_s8 = smov 512   ;;  %s382_s9 = smov 32  }
 0x101   :  { %327 = dma.vmem_to_hbm [thread:$0]  %s322_s2, 3072, %s486_s3, [#allocation3], %s381_s8, %s381_s8, %s382_s9  }
 0x102   :  { %376 = dma.done.wait [#allocation3], 3072  }
 0x103   :  { %377 = vsyncadd [#allocation3], 4294964224 }
 0x104   :  { %331 = vsyncpa [#allocation3], 1 }

</bundles_post_ra>
